<compile_context>
chip_gen: v7x
topology: tpu7x:2x2x1
jax: 0.10.0
libtpu: 0.0.40
codegen_flags: <defaults>
</compile_context>

<pallas_src>
import math
from functools import partial

import jax
import jax.numpy as jnp
from jax.experimental import pallas as pl
from jax.experimental.pallas import tpu as pltpu


# ----------------------------------------------------------------------------
# In-kernel helpers
# ----------------------------------------------------------------------------
_INV_SQRT2 = 0.7071067811865476
_SQRT_2_OVER_PI = 0.7978845608028654


def _gelu_erf(x):
    # Exact (erf-based) nn.GELU() — the PyTorch default.  Abramowitz & Stegun
    # 7.1.26 polynomial for erf(x/sqrt(2)), |err| < 1.5e-7; computed in f32 and
    # with an exact divide (perf-review correctness fix: no approx reciprocal).
    xf = x.astype(jnp.float32)
    a1, a2, a3, a4, a5 = 0.254829592, -0.284496736, 1.421413741, -1.453152027, 1.061405429
    p_scaled = 0.3275911 * _INV_SQRT2          # 1/sqrt(2) folded into the constants
    ax = jnp.abs(xf)
    s = jnp.where(xf >= 0.0, 1.0, -1.0)
    t = 1.0 / (1.0 + p_scaled * ax)
    poly = ((((a5 * t + a4) * t + a3) * t + a2) * t + a1) * t
    erf_z = s * (1.0 - poly * jnp.exp(-0.5 * ax * ax))   # erf(x / sqrt(2))
    return (0.5 * xf * (1.0 + erf_z)).astype(x.dtype)


def _gelu_tanh(x):
    # tanh-form GELU: ~6 VALU ops + one EUP tanh per element.  Max deviation
    # from exact erf-GELU is ~1e-3; use when VALU is the saturating slot
    # (v6e/v7x at realistic Electra sizes).  Computes in the incoming dtype, so
    # pass gelu_dtype=jnp.bfloat16 on chips with a bf16 VPU/EUP.
    inner = _SQRT_2_OVER_PI * (x + 0.044715 * x * x * x)
    return 0.5 * x * (1.0 + jnp.tanh(inner))


def _round_up(x, m):
    return ((x + m - 1) // m) * m


# ----------------------------------------------------------------------------
# Fused classification-head kernel
#   x_ref    : [TB, H]        bf16   (CLS vector; duplicated-concat folded into w1)
#   w1_ref   : [H,  D1]       bf16   (dense, concat-folded)
#   w23_ref  : [D1, D2]       bf16   (out_proj1 . dense2 folded)
#   w4_ref   : [D2, OUT_PAD]  bf16   (out_proj2, zero-padded to 128 lanes)
#   bias_ref : [3, width]     f32    (row0=b1, row1=b23, row2=b4, zero-padded)
#   out_ref  : [TB, OUT_PAD]  f32/bf16
# ----------------------------------------------------------------------------
def _head_kernel(x_ref, w1_ref, w23_ref, w4_ref, bias_ref, out_ref, *,
                 gelu_fn, gelu_dtype):
    D1 = w1_ref.shape[1]
    D2 = w23_ref.shape[1]
    OUT = w4_ref.shape[1]

    x = x_ref[...]                                   # bf16 matmul operand

    b1 = bias_ref[0:1, :D1]                          # f32, broadcast over rows
    b23 = bias_ref[1:2, :D2]
    b4 = bias_ref[2:3, :OUT]

    # gelu(dense(model_input))            (dropout == identity in eval mode)
    h = jnp.dot(x, w1_ref[...], preferred_element_type=jnp.float32) + b1
    h = gelu_fn(h.astype(gelu_dtype))

    # dense2(out_proj1(.)) folded into one linear (no nonlinearity in between),
    # followed by the module's second GELU.
    h = jnp.dot(h.astype(w23_ref.dtype), w23_ref[...],
                preferred_element_type=jnp.float32) + b23
    h = gelu_fn(h.astype(gelu_dtype))

    # out_proj2 (lane-dense, 128-wide; wrapper slices back to num_labels)
    logits = jnp.dot(h.astype(w4_ref.dtype), w4_ref[...],
                     preferred_element_type=jnp.float32) + b4
    out_ref[...] = logits.astype(out_ref.dtype)


# ----------------------------------------------------------------------------
# Pure-JAX reference (exact module head math, f32) — also the small-size path.
# ----------------------------------------------------------------------------
def _head_reference(cls_x, w1, b1, w2, b2, w3, b3, w4, b4):
    H = cls_x.shape[1]
    x = jnp.concatenate([cls_x, cls_x], axis=-1) if w1.shape[0] == 2 * H else cls_x
    h = jax.nn.gelu(x @ w1 + b1, approximate=False)
    h = h @ w2 + b2                                  # out_proj1 (no GELU after it)
    h = jax.nn.gelu(h @ w3 + b3, approximate=False)  # dense2 + GELU
    return h @ w4 + b4                               # out_proj2


# ----------------------------------------------------------------------------
# Host wrapper: algebraic folding, bias packing, padding, pallas_call
# ----------------------------------------------------------------------------
def classification_head(cls_x, w1, b1, w2, b2, w3, b3, w4, b4,
                        *, num_labels, out_pad=128, max_tile_b=256,
                        gelu_variant="erf", gelu_dtype=jnp.float32,
                        out_dtype=jnp.float32, use_pallas=None):
    B, H = cls_x.shape
    assert w1.shape[0] in (H, 2 * H), (
        "dense.in_features must be H (select_layers_len==1) or 2*H "
        "(select_layers_len==2 duplicated-CLS quirk); other values do not run "
        "in the original PyTorch module either.")
    D1 = w1.shape[1]
    D2 = w2.shape[1]
    assert out_pad % 128 == 0 and out_pad >= num_labels
    assert max_tile_b % 16 == 0

    if use_pallas is None:
        # At tiny sizes the kernel is pure fixed overhead; let XLA fuse it.
        use_pallas = B * H >= (1 << 15)
    if not use_pallas:
        return _head_reference(cls_x, w1, b1, w2, b2, w3, b3, w4, b4).astype(out_dtype)

    # --- exact host-side algebraic folding (eval mode, dropout = identity) ---
    # 1) duplicated-CLS concat baked into w1:  [c, c] @ w1 == c @ (w1[:H]+w1[H:])
    w1f = (w1[:H, :] + w1[H:, :]) if w1.shape[0] == 2 * H else w1
    # 2) out_proj1 followed immediately by dense2 (linear-linear) -> one linear
    w23 = w2 @ w3                                    # [D1, D2]
    b23 = b2 @ w3 + b3                               # [1,  D2]

    # --- lane-dense output: pad out_proj2 to `out_pad` columns ---
    w4p = jnp.zeros((D2, out_pad), w4.dtype).at[:, :num_labels].set(w4)
    b4p = jnp.zeros((1, out_pad), b4.dtype).at[:, :num_labels].set(b4)

    # --- pack the three biases into one f32 array (one DMA descriptor) ---
    width = max(D1, D2, out_pad)
    bias_pack = jnp.zeros((3, width), jnp.float32)
    bias_pack = bias_pack.at[0, :D1].set(b1[0].astype(jnp.float32))
    bias_pack = bias_pack.at[1, :D2].set(b23[0].astype(jnp.float32))
    bias_pack = bias_pack.at[2, :out_pad].set(b4p[0].astype(jnp.float32))

    # --- bf16 matmul operands (accumulation stays f32 inside the kernel) ---
    xb = cls_x.astype(jnp.bfloat16)
    w1b = w1f.astype(jnp.bfloat16)
    w23b = w23.astype(jnp.bfloat16)
    w4b = w4p.astype(jnp.bfloat16)

    # --- batch tiling: pad to a multiple of 16 (full sublanes even in bf16)
    #     and guarantee >= 2 grid steps so "parallel" can use both v7x TCs. ---
    Bp = _round_up(max(B, 1), 16)
    if Bp > max_tile_b:
        tb = max_tile_b
        Bp = _round_up(B, tb)
    else:
        tb = max(8, Bp // 2)                         # Bp % 16 == 0 -> tb % 8 == 0
    if Bp != B:
        xb = jnp.zeros((Bp, H), xb.dtype).at[:B].set(xb)
    grid = (Bp // tb,)

    gelu_fn = _gelu_erf if gelu_variant == "erf" else _gelu_tanh
    kernel = partial(_head_kernel, gelu_fn=gelu_fn, gelu_dtype=gelu_dtype)

    # --- advisory cost estimate for the XLA scheduler ---
    flops = 2 * Bp * (H * D1 + D1 * D2 + D2 * out_pad)
    transcendentals = Bp * (D1 + D2)                 # one exp/tanh per GELU element
    bytes_accessed = int(
        xb.size * 2 + w1b.size * 2 + w23b.size * 2 + w4b.size * 2
        + bias_pack.size * 4 + Bp * out_pad * jnp.dtype(out_dtype).itemsize)

    out = pl.pallas_call(
        kernel,
        out_shape=jax.ShapeDtypeStruct((Bp, out_pad), out_dtype),
        grid_spec=pltpu.PrefetchScalarGridSpec(
            num_scalar_prefetch=0,
            grid=grid,
            in_specs=[
                pl.BlockSpec((tb, H), lambda i: (i, 0)),      # x: tiled over batch
                pl.BlockSpec((H, D1), lambda i: (0, 0)),      # weights: grid-invariant
                pl.BlockSpec((D1, D2), lambda i: (0, 0)),
                pl.BlockSpec((D2, out_pad), lambda i: (0, 0)),
                pl.BlockSpec((3, width), lambda i: (0, 0)),   # packed biases
            ],
            out_specs=pl.BlockSpec((tb, out_pad), lambda i: (i, 0)),
        ),
        compiler_params=pltpu.CompilerParams(
            dimension_semantics=("parallel",),                # shard batch across cores
        ),
        cost_estimate=pl.CostEstimate(
            flops=flops,
            transcendentals=transcendentals,
            bytes_accessed=bytes_accessed),
    )(xb, w1b, w23b, w4b, bias_pack)

    return out[:B, :num_labels]


# ----------------------------------------------------------------------------
# Synthetic backbone + module forward (glue, plain JAX)
# ----------------------------------------------------------------------------
def synthetic_electra(input_ids, emb, layers):
    # TODO(synk): the pretrained ElectraModel backbone cannot be reproduced
    # without its checkpoint; a small deterministic embedding + tanh-MLP stack
    # stands in to produce the tuple of hidden states (output_hidden_states[1]).
    h = emb[input_ids]                               # [B, S, H]
    hidden_states = [h]
    for wl, bl in layers:
        h = jnp.tanh(h @ wl + bl)
        hidden_states.append(h)
    return tuple(hidden_states)


def forward(input_ids, params, select_layers_len, num_labels, **head_kwargs):
    hidden_states = synthetic_electra(input_ids, params["emb"], params["layers"])
    selected = hidden_states[len(hidden_states) - select_layers_len:]

    # PyTorch quirk, reproduced exactly: the selection loop overwrites the
    # running result every iteration, so only the LAST selected layer's CLS
    # survives, duplicated ([cls, cls]) iff select_layers_len > 1.  The
    # duplication is folded into w1 inside classification_head, so only the
    # [B, H] CLS vector crosses into the kernel.
    cls = selected[-1][:, 0, :]                      # [B, H]

    # Dropout layers are identity in eval mode; labels=None branch -> logits.
    return classification_head(
        cls,
        params["w1"], params["b1"],
        params["w2"], params["b2"],
        params["w3"], params["b3"],
        params["w4"], params["b4"],
        num_labels=num_labels,
        **head_kwargs)


# ----------------------------------------------------------------------------
# Deterministic parameter init (PyTorch nn.Linear default: U(-1/sqrt(fan_in), ..))
# ----------------------------------------------------------------------------
def init_linear(key, fan_in, fan_out):
    kw, kb = jax.random.split(key)
    bound = 1.0 / math.sqrt(fan_in)
    w = jax.random.uniform(kw, (fan_in, fan_out), jnp.float32, -bound, bound)
    b = jax.random.uniform(kb, (1, fan_out), jnp.float32, -bound, bound)
    return w, b


if __name__ == "__main__":
    B, S, H = 2, 8, 32          # batch, seq, hidden_size
    L = 2                       # select_layers_len
    NUM_LABELS = 5
    VOCAB = 100
    N_LAYERS = 4                # synthetic backbone depth

    key = jax.random.PRNGKey(0)
    keys = jax.random.split(key, 16)

    # synthetic backbone parameters
    emb = jax.random.normal(keys[0], (VOCAB, H), jnp.float32) * 0.02
    layers = []
    for i in range(N_LAYERS):
        wl = jax.random.normal(keys[1 + i], (H, H), jnp.float32) * (1.0 / math.sqrt(H))
        bl = jnp.zeros((H,), jnp.float32)
        layers.append((wl, bl))

    # head parameters (shapes from the module's __init__), stored as [in, out]
    D1 = H * L                  # hidden_size * select_layers_len        = 64
    D2 = D1 // 2                # hidden_size * select_layers_len // 2   = 32
    w1, b1 = init_linear(keys[8], D1, D1)            # self.dense
    w2, b2 = init_linear(keys[9], D1, D2)            # self.out_proj1
    w3, b3 = init_linear(keys[10], D2, D2)           # self.dense2
    w4, b4 = init_linear(keys[11], D2, NUM_LABELS)   # self.out_proj2

    params = dict(emb=emb, layers=layers,
                  w1=w1, b1=b1, w2=w2, b2=b2, w3=w3, b3=b3, w4=w4, b4=b4)

    input_ids = jax.random.randint(keys[12], (B, S), 0, VOCAB, dtype=jnp.int32)
    # attention_mask is accepted by the real module but unused by the synthetic backbone.

    # 1) Exact path (erf-GELU, f32 elementwise) through the Pallas kernel.
    #    use_pallas=True forces the kernel even at these tiny demo shapes.
    logits = forward(input_ids, params, L, NUM_LABELS, use_pallas=True)
    jax.block_until_ready(logits)
    assert logits.shape == (B, NUM_LABELS)

    # 2) Pure-JAX reference (exact module math, f32) for a numeric sanity check.
    ref = forward(input_ids, params, L, NUM_LABELS, use_pallas=False)
    jax.block_until_ready(ref)
    err = float(jnp.max(jnp.abs(logits - ref)))
    assert err < 5e-2, f"pallas vs reference mismatch: {err}"

    # 3) Fast-GELU path (EUP-routed tanh form).  On v6e/v7x additionally pass
    #    gelu_dtype=jnp.bfloat16 to halve VALU time; keep f32 on v5e.
    logits_fast = forward(input_ids, params, L, NUM_LABELS,
                          use_pallas=True, gelu_variant="tanh")
    jax.block_until_ready(logits_fast)
    err_fast = float(jnp.max(jnp.abs(logits_fast - ref)))
    assert err_fast < 1e-1, f"tanh-GELU path mismatch: {err_fast}"

    print("KERNEL_OK")
</pallas_src>

<mosaic_0001>
module attributes {stable_mosaic.version = 11 : i64} {
  func.func @_head_kernel(%arg0: i32, %arg1: memref<8x32xbf16, #tpu.memory_space<vmem>>, %arg2: memref<32x64xbf16, #tpu.memory_space<vmem>>, %arg3: memref<64x32xbf16, #tpu.memory_space<vmem>>, %arg4: memref<32x128xbf16, #tpu.memory_space<vmem>>, %arg5: memref<3x128xf32, #tpu.memory_space<vmem>>, %arg6: memref<8x128xf32, #tpu.memory_space<vmem>>) attributes {dimension_semantics = [#tpu.dimension_semantics<parallel>], iteration_bounds = array<i64: 2>, scalar_prefetch = 0 : i64, scratch_operands = 0 : i64, tpu.core_type = #tpu.core_type<tc>, window_params = [{transform_indices = @transform_0, window_bounds = array<i64: 8, 32>}, {pipeline_mode = #tpu.pipeline_mode<synchronous>, transform_indices = @transform_1, window_bounds = array<i64: 32, 64>}, {pipeline_mode = #tpu.pipeline_mode<synchronous>, transform_indices = @transform_2, window_bounds = array<i64: 64, 32>}, {pipeline_mode = #tpu.pipeline_mode<synchronous>, transform_indices = @transform_3, window_bounds = array<i64: 32, 128>}, {pipeline_mode = #tpu.pipeline_mode<synchronous>, transform_indices = @transform_4, window_bounds = array<i64: 3, 128>}, {transform_indices = @transform_5, window_bounds = array<i64: 8, 128>}]} {
    %c0 = arith.constant 0 : index
    %c0_0 = arith.constant 0 : index
    %0 = vector.load %arg1[%c0, %c0_0] : memref<8x32xbf16, #tpu.memory_space<vmem>>, vector<8x32xbf16>
    %c0_1 = arith.constant 0 : index
    %c0_2 = arith.constant 0 : index
    %1 = vector.load %arg5[%c0_1, %c0_2] : memref<3x128xf32, #tpu.memory_space<vmem>>, vector<1x64xf32>
    %c1 = arith.constant 1 : index
    %c0_3 = arith.constant 0 : index
    %2 = vector.load %arg5[%c1, %c0_3] : memref<3x128xf32, #tpu.memory_space<vmem>>, vector<1x32xf32>
    %c2 = arith.constant 2 : index
    %c0_4 = arith.constant 0 : index
    %3 = vector.load %arg5[%c2, %c0_4] : memref<3x128xf32, #tpu.memory_space<vmem>>, vector<1x128xf32>
    %c0_5 = arith.constant 0 : index
    %c0_6 = arith.constant 0 : index
    %4 = vector.load %arg2[%c0_5, %c0_6] : memref<32x64xbf16, #tpu.memory_space<vmem>>, vector<32x64xbf16>
    %cst = arith.constant dense<0.000000e+00> : vector<8x64xf32>
    %5 = tpu.matmul %0, %4, %cst {dimension_numbers = #tpu.dot_dimension_numbers<[1], [0], [0], [1], [0, 0, 1, 1], [], []>} : vector<8x32xbf16>, vector<32x64xbf16>, vector<8x64xf32> -> vector<8x64xf32>
    %6 = vector.broadcast %1 : vector<1x64xf32> to vector<8x64xf32>
    %7 = arith.addf %5, %6 : vector<8x64xf32>
    %8 = math.absf %7 : vector<8x64xf32>
    %cst_7 = arith.constant 0.000000e+00 : f32
    %9 = vector.broadcast %cst_7 : f32 to vector<8x64xf32>
    %10 = arith.cmpf oge, %7, %9 : vector<8x64xf32>
    %cst_8 = arith.constant 1.000000e+00 : f32
    %cst_9 = arith.constant -1.000000e+00 : f32
    %11 = vector.broadcast %cst_8 : f32 to vector<8x64xf32>
    %12 = vector.broadcast %cst_9 : f32 to vector<8x64xf32>
    %13 = arith.select %10, %11, %12 : vector<8x64xi1>, vector<8x64xf32>
    %cst_10 = arith.constant 0.231641889 : f32
    %14 = vector.broadcast %cst_10 : f32 to vector<8x64xf32>
    %15 = arith.mulf %14, %8 : vector<8x64xf32>
    %cst_11 = arith.constant 1.000000e+00 : f32
    %16 = vector.broadcast %cst_11 : f32 to vector<8x64xf32>
    %17 = arith.addf %16, %15 : vector<8x64xf32>
    %cst_12 = arith.constant 1.000000e+00 : f32
    %18 = vector.broadcast %cst_12 : f32 to vector<8x64xf32>
    %19 = arith.divf %18, %17 : vector<8x64xf32>
    %cst_13 = arith.constant 1.06140542 : f32
    %20 = vector.broadcast %cst_13 : f32 to vector<8x64xf32>
    %21 = arith.mulf %20, %19 : vector<8x64xf32>
    %cst_14 = arith.constant -1.45315206 : f32
    %22 = vector.broadcast %cst_14 : f32 to vector<8x64xf32>
    %23 = arith.addf %21, %22 : vector<8x64xf32>
    %24 = arith.mulf %23, %19 : vector<8x64xf32>
    %cst_15 = arith.constant 1.42141378 : f32
    %25 = vector.broadcast %cst_15 : f32 to vector<8x64xf32>
    %26 = arith.addf %24, %25 : vector<8x64xf32>
    %27 = arith.mulf %26, %19 : vector<8x64xf32>
    %cst_16 = arith.constant -0.284496725 : f32
    %28 = vector.broadcast %cst_16 : f32 to vector<8x64xf32>
    %29 = arith.addf %27, %28 : vector<8x64xf32>
    %30 = arith.mulf %29, %19 : vector<8x64xf32>
    %cst_17 = arith.constant 0.254829586 : f32
    %31 = vector.broadcast %cst_17 : f32 to vector<8x64xf32>
    %32 = arith.addf %30, %31 : vector<8x64xf32>
    %33 = arith.mulf %32, %19 : vector<8x64xf32>
    %cst_18 = arith.constant -5.000000e-01 : f32
    %34 = vector.broadcast %cst_18 : f32 to vector<8x64xf32>
    %35 = arith.mulf %34, %8 : vector<8x64xf32>
    %36 = arith.mulf %35, %8 : vector<8x64xf32>
    %37 = math.exp %36 : vector<8x64xf32>
    %38 = arith.mulf %33, %37 : vector<8x64xf32>
    %cst_19 = arith.constant 1.000000e+00 : f32
    %39 = vector.broadcast %cst_19 : f32 to vector<8x64xf32>
    %40 = arith.subf %39, %38 : vector<8x64xf32>
    %41 = arith.mulf %13, %40 : vector<8x64xf32>
    %cst_20 = arith.constant 5.000000e-01 : f32
    %42 = vector.broadcast %cst_20 : f32 to vector<8x64xf32>
    %43 = arith.mulf %42, %7 : vector<8x64xf32>
    %cst_21 = arith.constant 1.000000e+00 : f32
    %44 = vector.broadcast %cst_21 : f32 to vector<8x64xf32>
    %45 = arith.addf %44, %41 : vector<8x64xf32>
    %46 = arith.mulf %43, %45 : vector<8x64xf32>
    %47 = arith.truncf %46 : vector<8x64xf32> to vector<8x64xbf16>
    %c0_22 = arith.constant 0 : index
    %c0_23 = arith.constant 0 : index
    %48 = vector.load %arg3[%c0_22, %c0_23] : memref<64x32xbf16, #tpu.memory_space<vmem>>, vector<64x32xbf16>
    %cst_24 = arith.constant dense<0.000000e+00> : vector<8x32xf32>
    %49 = tpu.matmul %47, %48, %cst_24 {dimension_numbers = #tpu.dot_dimension_numbers<[1], [0], [0], [1], [0, 0, 1, 1], [], []>} : vector<8x64xbf16>, vector<64x32xbf16>, vector<8x32xf32> -> vector<8x32xf32>
    %50 = vector.broadcast %2 : vector<1x32xf32> to vector<8x32xf32>
    %51 = arith.addf %49, %50 : vector<8x32xf32>
    %52 = math.absf %51 : vector<8x32xf32>
    %cst_25 = arith.constant 0.000000e+00 : f32
    %53 = vector.broadcast %cst_25 : f32 to vector<8x32xf32>
    %54 = arith.cmpf oge, %51, %53 : vector<8x32xf32>
    %cst_26 = arith.constant 1.000000e+00 : f32
    %cst_27 = arith.constant -1.000000e+00 : f32
    %55 = vector.broadcast %cst_26 : f32 to vector<8x32xf32>
    %56 = vector.broadcast %cst_27 : f32 to vector<8x32xf32>
    %57 = arith.select %54, %55, %56 : vector<8x32xi1>, vector<8x32xf32>
    %cst_28 = arith.constant 0.231641889 : f32
    %58 = vector.broadcast %cst_28 : f32 to vector<8x32xf32>
    %59 = arith.mulf %58, %52 : vector<8x32xf32>
    %cst_29 = arith.constant 1.000000e+00 : f32
    %60 = vector.broadcast %cst_29 : f32 to vector<8x32xf32>
    %61 = arith.addf %60, %59 : vector<8x32xf32>
    %cst_30 = arith.constant 1.000000e+00 : f32
    %62 = vector.broadcast %cst_30 : f32 to vector<8x32xf32>
    %63 = arith.divf %62, %61 : vector<8x32xf32>
    %cst_31 = arith.constant 1.06140542 : f32
    %64 = vector.broadcast %cst_31 : f32 to vector<8x32xf32>
    %65 = arith.mulf %64, %63 : vector<8x32xf32>
    %cst_32 = arith.constant -1.45315206 : f32
    %66 = vector.broadcast %cst_32 : f32 to vector<8x32xf32>
    %67 = arith.addf %65, %66 : vector<8x32xf32>
    %68 = arith.mulf %67, %63 : vector<8x32xf32>
    %cst_33 = arith.constant 1.42141378 : f32
    %69 = vector.broadcast %cst_33 : f32 to vector<8x32xf32>
    %70 = arith.addf %68, %69 : vector<8x32xf32>
    %71 = arith.mulf %70, %63 : vector<8x32xf32>
    %cst_34 = arith.constant -0.284496725 : f32
    %72 = vector.broadcast %cst_34 : f32 to vector<8x32xf32>
    %73 = arith.addf %71, %72 : vector<8x32xf32>
    %74 = arith.mulf %73, %63 : vector<8x32xf32>
    %cst_35 = arith.constant 0.254829586 : f32
    %75 = vector.broadcast %cst_35 : f32 to vector<8x32xf32>
    %76 = arith.addf %74, %75 : vector<8x32xf32>
    %77 = arith.mulf %76, %63 : vector<8x32xf32>
    %cst_36 = arith.constant -5.000000e-01 : f32
    %78 = vector.broadcast %cst_36 : f32 to vector<8x32xf32>
    %79 = arith.mulf %78, %52 : vector<8x32xf32>
    %80 = arith.mulf %79, %52 : vector<8x32xf32>
    %81 = math.exp %80 : vector<8x32xf32>
    %82 = arith.mulf %77, %81 : vector<8x32xf32>
    %cst_37 = arith.constant 1.000000e+00 : f32
    %83 = vector.broadcast %cst_37 : f32 to vector<8x32xf32>
    %84 = arith.subf %83, %82 : vector<8x32xf32>
    %85 = arith.mulf %57, %84 : vector<8x32xf32>
    %cst_38 = arith.constant 5.000000e-01 : f32
    %86 = vector.broadcast %cst_38 : f32 to vector<8x32xf32>
    %87 = arith.mulf %86, %51 : vector<8x32xf32>
    %cst_39 = arith.constant 1.000000e+00 : f32
    %88 = vector.broadcast %cst_39 : f32 to vector<8x32xf32>
    %89 = arith.addf %88, %85 : vector<8x32xf32>
    %90 = arith.mulf %87, %89 : vector<8x32xf32>
    %91 = arith.truncf %90 : vector<8x32xf32> to vector<8x32xbf16>
    %c0_40 = arith.constant 0 : index
    %c0_41 = arith.constant 0 : index
    %92 = vector.load %arg4[%c0_40, %c0_41] : memref<32x128xbf16, #tpu.memory_space<vmem>>, vector<32x128xbf16>
    %cst_42 = arith.constant dense<0.000000e+00> : vector<8x128xf32>
    %93 = tpu.matmul %91, %92, %cst_42 {dimension_numbers = #tpu.dot_dimension_numbers<[1], [0], [0], [1], [0, 0, 1, 1], [], []>} : vector<8x32xbf16>, vector<32x128xbf16>, vector<8x128xf32> -> vector<8x128xf32>
    %94 = vector.broadcast %3 : vector<1x128xf32> to vector<8x128xf32>
    %95 = arith.addf %93, %94 : vector<8x128xf32>
    %c0_43 = arith.constant 0 : index
    %c0_44 = arith.constant 0 : index
    %96 = vector.load %arg6[%c0_43, %c0_44] : memref<8x128xf32, #tpu.memory_space<vmem>>, vector<8x128xf32>
    tpu.vector_store %arg6[%c0_43, %c0_44], %95 {strides = array<i32>} : memref<8x128xf32, #tpu.memory_space<vmem>>, vector<8x128xf32>,
    return
  }
  func.func @transform_0(%arg0: i32) -> (i32, i32) {
    %c0_i32 = arith.constant 0 : i32
    %c0_i32_0 = arith.constant 0 : i32
    return %arg0, %c0_i32 : i32, i32
  }
  func.func @transform_1(%arg0: i32) -> (i32, i32) {
    %c0_i32 = arith.constant 0 : i32
    %c0_i32_0 = arith.constant 0 : i32
    %c0_i32_1 = arith.constant 0 : i32
    return %c0_i32, %c0_i32_0 : i32, i32
  }
  func.func @transform_2(%arg0: i32) -> (i32, i32) {
    %c0_i32 = arith.constant 0 : i32
    %c0_i32_0 = arith.constant 0 : i32
    %c0_i32_1 = arith.constant 0 : i32
    return %c0_i32, %c0_i32_0 : i32, i32
  }
  func.func @transform_3(%arg0: i32) -> (i32, i32) {
    %c0_i32 = arith.constant 0 : i32
    %c0_i32_0 = arith.constant 0 : i32
    %c0_i32_1 = arith.constant 0 : i32
    return %c0_i32, %c0_i32_0 : i32, i32
  }
  func.func @transform_4(%arg0: i32) -> (i32, i32) {
    %c0_i32 = arith.constant 0 : i32
    %c0_i32_0 = arith.constant 0 : i32
    %c0_i32_1 = arith.constant 0 : i32
    return %c0_i32, %c0_i32_0 : i32, i32
  }
  func.func @transform_5(%arg0: i32) -> (i32, i32) {
    %c0_i32 = arith.constant 0 : i32
    %c0_i32_0 = arith.constant 0 : i32
    return %arg0, %c0_i32 : i32, i32
  }
}

</mosaic_0001>

<bundles_post_ra>
// kernel: tpu_custom_call.1
= control target key start
LH: loop header
LB: loop body
LE: loop exit
PB: predicated region body
PF: predicated region fallthrough
CT: control target
= control target key end

     0   :  { %10 = vsyncpa [#allocation3], 0  ;;  %s925_s0 = inlined_call_operand.vmem [shape: bf16[16,32], index: 0, kind: input, shape index: {}]   ;;  %s926_s1 = inlined_call_operand.vmem [shape: bf16[32,64], index: 1, kind: input, shape index: {}]   ;;  %s927_s2 = inlined_call_operand.vmem [shape: bf16[64,32], index: 2, kind: input, shape index: {}]   ;;  %s928_s3 = inlined_call_operand.vmem [shape: bf16[32,128], index: 3, kind: input, shape index: {}]   ;;  %s929_s4 = inlined_call_operand.vmem [shape: f32[3,128], index: 4, kind: input, shape index: {}]   ;;  %s930_s5 = inlined_call_operand.hbm [shape: f32[16,128], index: 5, kind: output, shape index: {}]  }
   0x1   :  { %12 = vsyncpa [#allocation3 + $0x1], 0  ;;  %s779_s18 = smov 0   ;;  %s781_s19 = smov 0  }
   0x2   :  { %s783_s20 = smov 0   ;;  %s785_s21 = smov 0  }
   0x3 LB: > { %s800_s22 = sadd.s32 4294967295, %s743_s21   ;;  %s560_s23 = sadd.s32 4294967294, %s743_s21   ;;  %s743_s21 = sphi %s785_s21, %s936_s21   ;;  %s739_s20 = sphi %s783_s20, %s935_s20   ;;  %s735_s19 = sphi %s781_s19, %s934_s19   ;;  %s731_s18 = sphi %s779_s18, %s933_s18  }
   0x4   : > { %s804_s24 = sadd.s32 1, %s743_s21   ;;  %s135_s25 = sadd.s32 1, %s739_s20 }
   0x5   : > { %s132_s26 = ssub.s32 %s743_s21, %s804_s24  ;;  %p145_p0 = scmp.ne.s32.totalorder %s739_s20, %s735_s19 }
   0x6   : > { %p133_p1 = scmp.eq.s32.totalorder %s132_s26, 0  ;;  %p146_p2 = scmp.eq.s32.totalorder %s800_s22, 1 }
   0x7   : > { %p151_p3 = scmp.ne.s32.totalorder %s735_s19, %s731_s18  ;;  %p152_p4 = scmp.eq.s32.totalorder %s560_s23, 1 }
   0x8   : > { %s815_s27 = scalar_select %p133_p1, %s739_s20, %s135_s25  }
   0x9   : > { %p817_p5 = por %p146_p2, %p145_p0  ;;  %p821_p6 = por %p152_p4, %p151_p3 }
   0xa   : > { %p563_p7 = scmp.ge.s32.totalorder %s743_s21, 1  ;;  %p189_p8 = scmp.lt.s32.totalorder %s743_s21, 3 }
   0xc   : > { %p190_p9 = pnand %p563_p7, %p189_p8 }
   0xd   : > { %v665_v0 = vld [vmem:[%s926_s1] sm:$0xff] (!%p190_p9)   ;;  %v745_v1 = vmov (!%p190_p9), 0.0   ;;  %v666_v2 = vld [vmem:[%s926_s1 + $0x8] sm:$0xff] (!%p190_p9)   ;;  %vm746_vm0 = vmmov (!%p190_p9), 0   ;;  %p216_p10 = scmp.lt.s32.totalorder (!%p190_p9), %s800_s22, 1  ;;  %vm245_vm1 = vcmask (!%p190_p9), 261120  }
   0xe   : > { %193 = sbr.rel (%p190_p9) target bundleno = 776 (0x308), region = 40  ;;  %595 = vmatprep.subr.bf16.mxu0 (!%p190_p9), %v745_v1  ;;  %603 = vmatprep.subr.bf16.mxu1 (!%p190_p9), %v745_v1  ;;  %v667_v4 = vld [vmem:[%s927_s2] sm:$0xff] (!%p190_p9)   ;;  %v668_v5 = vld [vmem:[%s927_s2 + $0x8] sm:$0xff] (!%p190_p9)   ;;  %v669_v6 = vld [vmem:[%s927_s2 + $0x10] sm:$0xff] (!%p190_p9)   ;;  %v747_v33 = vmov (!%p190_p9), -1.0   ;;  %vm352_vm3 = vcmask (!%p190_p9), 523264  }
   0xf   : > { %596 = vmatpush3.bf16.msra.mxu0 (!%p190_p9), %v665_v0  ;;  %599 = vmatprep.mubr.msk.bf16.mxu0 (!%p190_p9), %vm746_vm0, %v745_v1  ;;  %v670_v7 = vld [vmem:[%s927_s2 + $0x18] sm:$0xff] (!%p190_p9)   ;;  %v566_v8 = vld [vmem:[%s929_s4] ss:$0 sm:$0xff] (!%p190_p9)  ;;  %v672_v41 = vld [vmem:[%s928_s3 + $0x8] sm:$0xff] (!%p190_p9)   ;;  %s213_s14 = sand.u32 (!%p190_p9), 1, %s735_s19   ;;  %s581_s23 = sshll.u32 (!%p190_p9), %s800_s22, 7 }
  0x10   : > { %597 = vmatprep.subr.bf16.mxu0 (!%p190_p9), %v745_v1  ;;  %611 = vmatprep.mubr.msk.bf16.mxu1 (!%p190_p9), %vm746_vm0, %v745_v1  ;;  %v671_v40 = vld [vmem:[%s928_s3] sm:$0xff] (!%p190_p9)   ;;  %s564_s15 = sshll.u32 (!%p190_p9), %s213_s14, 3  ;;  %s883_s7 = scalar_lea.hbm (!%p190_p9), %s930_s5, %s581_s23 }
  0x11   : > { %604 = vmatpush3.bf16.msra.mxu1 (!%p190_p9), %v667_v4  ;;  %v570_v42 = vld [vmem:[%s929_s4 + $0x1] ss:$0 sm:$0xff] (!%p190_p9)  ;;  %s215_s25 = scalar_lea.vmem (!%p190_p9), [#allocation2], %s564_s15  ;;  %s488_s8 = scalar_lea.sflag (!%p190_p9), [#allocation3], %s213_s14 }
  0x12   : > { %605 = vmatprep.subr.bf16.mxu1 (!%p190_p9), %v745_v1  ;;  %s501_s26 = sshll.u32 (!%p190_p9), %s215_s25, 4  ;;  %s885_s26 = int_to_ptr.vmem [resolvable:$true] %s501_s26 }
  0x13   : > { %598 = vmatpush3.bf16.msra.mxu0 (!%p190_p9), %v666_v2 }
  0x14   : > { %615 = vmatprep.subr.bf16.mxu0 (!%p190_p9), %v745_v1 }
  0x15   : > { %s217_s9 = scalar_select %p216_p10, %s800_s22, 1  ;;  %606 = vmatpush3.bf16.msra.mxu1 %v668_v5 }
  0x16   : > { %607 = vmatprep.subr.bf16.mxu1 %v745_v1  ;;  %s681_s22 = scalar_lea.vmem %s885_s26, 128 }
  0x17   : > { %s565_s10 = sshll.u32 %s217_s9, 2  ;;  %p682_p11 = scmp.ne.s32.totalorder %s885_s26, %s681_s22 }
  0x18   : > { %s219_s13 = scalar_lea.vmem %s925_s0, %s565_s10  ;;  %s748_s9 = smov [#allocation2]  }
  0x19   : > { %v221_v3 = vld [vmem:[%s219_s13] sm:$0xf]  ;;  %608 = vmatpush3.bf16.msra.mxu1 %v669_v6  ;;  %p683_p12 = pnand %p682_p11, %p817_p5  ;;  %s685_s10 = sshll.u32 %s748_s9, 4  ;;  %s686_s10 = int_to_ptr.vmem [resolvable:$false] %s685_s10 }
  0x1a   : > { %600 = vmatmul.mubr.msk.bf16.vlgmr.msra.gmra.mrb[0].mxu0 %vm245_vm1, %v221_v3  ;;  %609 = vmatprep.subr.bf16.mxu1 %v745_v1  ;;  %s687_s11 = scalar_lea.vmem %s686_s10, 256  ;;  %p688_p0 = scmp.lt.s32.totalorder %s885_s26, %s686_s10 }
  0x1b   : > { %619 = vmatprep.mubr.msk.bf16.mxu0 %vm746_vm0, %v745_v1  ;;  %616 = vmatpush3.bf16.msra.mxu0 %v671_v40  ;;  %p684_p13 = pneg %p683_p12  ;;  %p689_p1 = scmp.lt.s32.totalorder %s687_s11, %s681_s22 }
  0x1c   : > { %617 = vmatprep.subr.bf16.mxu0 %v745_v1 }
  0x1d   : > { %610 = vmatpush3.bf16.msra.mxu1 %v670_v7  ;;  %p690_p2 = por %p689_p1, %p688_p0 }
  0x1f   : > { %618 = vmatpush3.bf16.msra.mxu0 %v672_v41  ;;  %p691_p3 = pnand %p690_p2, %p684_p13 }
  0xed   : > { %v283_v9 = vpop.f32.mrb[0].mxu0 }
  0xee   : > { %v284_v10 = vadd.f32 %v566_v8, %v283_v9  ;;  %v601_v11 = vpop.f32.mrb[1].mxu0  ;;  %v576_v9 = vld [vmem:[%s929_s4 + $0x2] ss:$0 sm:$0xff] }
  0xef   : > { %v286_v12 = vpop.f32.mrb[2].mxu0 }
  0xf0   : > { %v289_v13 = vand.u32 2147483647, %v284_v10  ;;  %v602_v14 = vpop.f32.mrb[3].mxu0  ;;  %vm290_vm2 = vcmp.ge.f32.partialorder %v284_v10, 0.0  ;;  %v312_v36 = vmul.f32 0.5, %v284_v10 }
  0xf1   : > { %v291_v34 = vsel %vm290_vm2, 1.0, %v747_v33 }
  0xf2   : > { %v292_v15 = vmul.f32 0.23164189, %v289_v13  ;;  %v305_v17 = vmul.f32 -0.5, %v289_v13 }
  0xf4   : > { %v293_v16 = vadd.f32 1.0, %v292_v15  ;;  %v306_v19 = vmul.f32 %v305_v17, %v289_v13 }
  0xf6   : > { %673 = vrcp.f32 %v293_v16  ;;  %v307_v22 = vmul.f32 1.442695, %v306_v19 }
  0xf8   : > { %675 = vpow2.f32 %v307_v22 }
 0x100   : > { %v674_v18 = vpop.eup %673 }
 0x101   : > { %v296_v20 = vmul.f32 1.0614054, %v674_v18 }
 0x102   : > { %v676_v30 = vpop.eup %675 }
 0x103   : > { %v297_v21 = vadd.f32 -1.4531521, %v296_v20 }
 0x105   : > { %v298_v23 = vmul.f32 %v674_v18, %v297_v21 }
 0x107   : > { %v299_v24 = vadd.f32 1.4214138, %v298_v23 }
 0x109   : > { %v300_v25 = vmul.f32 %v674_v18, %v299_v24 }
 0x10b   : > { %v301_v26 = vadd.f32 -0.28449672, %v300_v25 }
 0x10d   : > { %v302_v27 = vmul.f32 %v674_v18, %v301_v26 }
 0x10f   : > { %v303_v28 = vadd.f32 0.2548296, %v302_v27 }
 0x111   : > { %v304_v29 = vmul.f32 %v674_v18, %v303_v28 }
 0x113   : > { %v309_v31 = vmul.f32 %v676_v30, %v304_v29 }
 0x115   : > { %v310_v32 = vsub.f32 1.0, %v309_v31 }
 0x117   : > { %v311_v35 = vmul.f32 %v310_v32, %v291_v34 }
 0x119   : > { %v313_v37 = vadd.f32 1.0, %v311_v35 }
 0x11b   : > { %v314_v38 = vmul.f32 %v313_v37, %v312_v36 }
 0x11d   : > { %v315_v39 = vpack.c.bf16 %v314_v38, %v314_v38 }
 0x11f   : > { %612 = vmatmul.mubr.msk.bf16.vlgmr.msra.gmra.mrb[0].mxu1 %vm352_vm3, %v315_v39 }
 0x1f2   : > { %v390_v43 = vpop.f32.mrb[0].mxu1 }
 0x1f3   : > { %v391_v44 = vadd.f32 %v570_v42, %v390_v43  ;;  %v613_v45 = vpop.f32.mrb[1].mxu1 }
 0x1f4   : > { %v393_v46 = vpop.f32.mrb[2].mxu1 }
 0x1f5   : > { %v396_v47 = vand.u32 2147483647, %v391_v44  ;;  %v614_v48 = vpop.f32.mrb[3].mxu1  ;;  %vm397_vm4 = vcmp.ge.f32.partialorder %v391_v44, 0.0  ;;  %v419_v5 = vmul.f32 0.5, %v391_v44 }
 0x1f6   : > { %v398_v3 = vsel %vm397_vm4, 1.0, %v747_v33 }
 0x1f7   : > { %v399_v49 = vmul.f32 0.23164189, %v396_v47  ;;  %v412_v51 = vmul.f32 -0.5, %v396_v47 }
 0x1f9   : > { %v400_v50 = vadd.f32 1.0, %v399_v49  ;;  %v413_v53 = vmul.f32 %v412_v51, %v396_v47 }
 0x1fb   : > { %677 = vrcp.f32 %v400_v50  ;;  %v414_v56 = vmul.f32 1.442695, %v413_v53 }
 0x1fd   : > { %679 = vpow2.f32 %v414_v56 }
 0x205   : > { %v678_v52 = vpop.eup %677 }
 0x206   : > { %v403_v54 = vmul.f32 1.0614054, %v678_v52 }
 0x207   : > { %v680_v0 = vpop.eup %679 }
 0x208   : > { %v404_v55 = vadd.f32 -1.4531521, %v403_v54 }
 0x20a   : > { %v405_v57 = vmul.f32 %v678_v52, %v404_v55 }
 0x20c   : > { %v406_v58 = vadd.f32 1.4214138, %v405_v57 }
 0x20e   : > { %v407_v59 = vmul.f32 %v678_v52, %v406_v58 }
 0x210   : > { %v408_v60 = vadd.f32 -0.28449672, %v407_v59 }
 0x212   : > { %v409_v61 = vmul.f32 %v678_v52, %v408_v60 }
 0x214   : > { %v410_v62 = vadd.f32 0.2548296, %v409_v61 }
 0x216   : > { %v411_v63 = vmul.f32 %v678_v52, %v410_v62 }
 0x218   : > { %v416_v1 = vmul.f32 %v680_v0, %v411_v63 }
 0x21a   : > { %v417_v2 = vsub.f32 1.0, %v416_v1 }
 0x21c   : > { %v418_v4 = vmul.f32 %v417_v2, %v398_v3 }
 0x21e   : > { %v420_v6 = vadd.f32 1.0, %v418_v4 }
 0x220   : > { %v421_v7 = vmul.f32 %v420_v6, %v419_v5 }
 0x222   : > { %v422_v8 = vpack.c.bf16 %v421_v7, %v421_v7 }
 0x224   : > { %620 = vmatmul.mubr.msk.bf16.vlgmr.msra.gmra.mrb[4].mxu0 %vm245_vm1, %v422_v8 }
 0x2f7   : > { %v480_v10 = vpop.f32.mrb[4].mxu0 }
 0x2f8   : > { %v481_v11 = vadd.f32 %v576_v9, %v480_v10  ;;  %v621_v12 = vpop.f32.mrb[5].mxu0 }
 0x2f9   : > { %v483_v13 = vpop.f32.mrb[6].mxu0 }
 0x2fa   : > { %486 = vst [vmem:[%s215_s25] sm:$0xff] %v481_v11  ;;  %v622_v14 = vpop.f32.mrb[7].mxu0 }
 0x2fb   : > { %694 = shalt.err (!%p691_p3)
}
 0x2fc   : > { %s695_s12 = scalar_lea.hbm %s883_s7, 128  ;;  %s699_s15 = scalar_lea.hbm %s930_s5, 256 }
 0x2fd   : > { %p696_p4 = scmp.ne.s32.totalorder %s883_s7, %s695_s12  ;;  %p700_p9 = scmp.lt.u32.totalorder %s883_s7, %s930_s5 }
 0x2fe   : > { %p701_p10 = scmp.lt.u32.totalorder %s699_s15, %s695_s12  ;;  %p703_p12 = scmp.lt.u32.totalorder %s695_s12, %s883_s7 }
 0x2ff   : > { %p697_p7 = pnand %p696_p4, %p817_p5 }
 0x300   : > { %p702_p11 = por %p701_p10, %p700_p9 }
 0x301   : > { %p698_p8 = pneg %p697_p7 }
 0x302   : > { %p704_p13 = por %p703_p12, %p702_p11 }
 0x304   : > { %p705_p0 = pnand %p704_p13, %p698_p8 }
 0x306   : > { %708 = shalt.err (!%p705_p0)
}
 0x307   : > { %623 = dma.vmem_to_hbm [thread:$0]  (%p817_p5), %s885_s26, 128, %s883_s7, %s488_s8  }
 0x308 PF: > { %p629_p1 = scmp.ge.s32.totalorder %s743_s21, 2  ;;  %s513_s23 = sand.u32 1, %s731_s18  }
 0x309   : > { %s514_s25 = scalar_lea.sflag [#allocation3], %s513_s23 }
 0x30a   : > { %p626_p2 = pnand %p629_p1, %p821_p6 }
 0x30c   : > { %726 = dma.done.wait (!%p626_p2), %s514_s25, 128  }
 0x30d   : > { %728 = vsyncadd (!%p626_p2), %s514_s25, 4294967168  ;;  %p15_p3 = scmp.ge.s32.totalorder %s804_s24, 4   ;;  %s933_s18 = smov %s735_s19 }
 0x30e   : > { %s934_s19 = smov %s739_s20  ;;  %s935_s20 = smov %s815_s27 }
 0x30f   : > { %s936_s21 = smov %s804_s24  ;;  %17 = sbr.rel (!%p15_p3) target bundleno = 3 (0x3), region = 75 }
 0x316   :  { %519 = vsyncpa [#allocation3], 1 }
 0x317   :  { %521 = vsyncpa [#allocation3 + $0x1], 1 }

</bundles_post_ra>
